<compile_context>
chip_gen: v7x
topology: tpu7x:2x2x1
jax: 0.10.0
libtpu: 0.0.40
codegen_flags: <defaults>
</compile_context>

<pallas_src>
import functools
from typing import Optional

import jax
import jax.numpy as jnp
from jax.experimental import pallas as pl
from jax.experimental.pallas import tpu as pltpu


def make_divisible(v: float, divisor: int, min_value: Optional[int] = None) -> int:
    if min_value is None:
        min_value = divisor
    new_v = max(min_value, int(v + divisor / 2) // divisor * divisor)
    if new_v < 0.9 * v:
        new_v += divisor
    return new_v


def _vmem_capacity_bytes() -> int:
    """Physical per-core VMEM; conservative fallback works on every generation."""
    try:
        return int(pltpu.get_tpu_info().vmem_capacity_bytes)
    except Exception:
        return 64 << 20  # v7x per-TensorCore VMEM (smallest of v5e/v6e/v7x)


# ----------------- fused single-pass kernel (grid over batch) -------------------
def _fused_kernel(x_ref, w1_ref, b1_ref, w2_ref, b2_ref, o_ref, *, inv_s):
    x = x_ref[...]                                                    # (1, C, S)
    pooled = jnp.sum(x, axis=-1, dtype=jnp.float32) * inv_s           # (1, C) mean
    h = jnp.dot(pooled, w1_ref[...],
                preferred_element_type=jnp.float32) + b1_ref[...]     # (1, Hid)
    h = jnp.maximum(h, 0.0)
    s = jnp.dot(h, w2_ref[...],
                preferred_element_type=jnp.float32) + b2_ref[...]     # (1, C)
    scale = jax.nn.sigmoid(s)                                         # (1, C) f32
    o_ref[...] = x * scale[:, :, None].astype(x.dtype)                # bcast over lanes


# -------------- tiled path, pass 1: spatial sum (f32 resident acc) --------------
def _pool_kernel(x_ref, sum_ref):
    # x_ref: (tR, tS) input dtype; sum_ref: (tR, 1) f32, resident across s-axis.
    # With large (multi-MiB) lane tiles the per-step cross-lane reduce + narrow
    # accumulator update is negligible next to the tile DMA.
    @pl.when(pl.program_id(1) == 0)
    def _():
        sum_ref[...] = jnp.zeros_like(sum_ref)

    sum_ref[...] += jnp.sum(x_ref[...], axis=-1, keepdims=True, dtype=jnp.float32)


# -------------- tiled path, pass 2: broadcast-multiply stream -------------------
def _scale_kernel(x_ref, scale_ref, o_ref):
    x = x_ref[...]                                      # (tR, tS), input dtype
    o_ref[...] = x * scale_ref[...].astype(x.dtype)     # (tR, 1) bcast over lanes


# ------------------------------- tiling helpers ---------------------------------
def _row_tile(rows: int) -> int:
    """Sublane tile: multiple of 8 dividing rows, preferring >=2 row tiles."""
    if rows % 8 != 0:
        return rows                       # full-dim block (allowed by Pallas)
    for t in (64, 32, 16, 8):
        if rows % t == 0 and rows // t >= 2:
            return t
    return rows


def _lane_tile(s: int, t_rows: int, itemsize: int, target_bytes: int) -> int:
    """Lane tile: multiple of 128 near target_bytes per block; may require padding."""
    cap = max(128, (target_bytes // max(1, t_rows * itemsize)) // 128 * 128)
    s_up = ((s + 127) // 128) * 128
    cap = min(cap, s_up)
    if s % 128 == 0:
        t = cap
        while t >= max(128, cap // 2):
            if s % t == 0:
                return t                  # exact divisor: no padding needed
            t -= 128
    return cap                            # pad S up to a multiple of cap


# --------------------------------- forward --------------------------------------
def mcattn_forward(x_ncdhw, w1, b1, w2, b2, *, force_tiled: bool = False):
    """x_ncdhw: (B, C, D, H, W). w1: (Hid, C), b1: (Hid,), w2: (C, Hid), b2: (C,)."""
    B, C, D, H, W = x_ncdhw.shape
    S = D * H * W
    Hid = w1.shape[0]
    dtype = x_ncdhw.dtype
    itemsize = jnp.dtype(dtype).itemsize

    # Channels on sublanes, spatial on lanes.  Pure reshapes: no HBM transpose.
    x_bcs = x_ncdhw.reshape(B, C, S)
    w1_t = jnp.transpose(w1)              # (C, Hid)
    w2_t = jnp.transpose(w2)              # (Hid, C)
    b1_2d = b1.reshape(1, Hid)
    b2_2d = b2.reshape(1, C)

    vmem_cap = _vmem_capacity_bytes()
    vmem_budget = (vmem_cap * 3) // 4      # leave compiler headroom

    slab_bytes = C * S * itemsize          # one batch's (C, S) slab
    fused_ok = (not force_tiled and S % 128 == 0
                and 4 * slab_bytes + (4 << 20) <= vmem_budget)

    # ---------------- fused single-pass path (2x HBM traffic) -------------------
    if fused_ok:
        vmem_limit = int(min(vmem_budget, max(32 << 20, 4 * slab_bytes + (4 << 20))))
        cost = pl.CostEstimate(
            flops=int(2 * B * C * S + 4 * B * C * Hid),
            transcendentals=int(B * C),
            bytes_accessed=int(2 * B * C * S * itemsize + 4 * (2 * C * Hid + Hid + C)))
        out = pl.pallas_call(
            functools.partial(_fused_kernel, inv_s=1.0 / float(S)),
            out_shape=jax.ShapeDtypeStruct((B, C, S), dtype),
            grid_spec=pltpu.PrefetchScalarGridSpec(
                num_scalar_prefetch=0,
                grid=(B,),
                in_specs=[
                    pl.BlockSpec((1, C, S), lambda b: (b, 0, 0)),
                    pl.BlockSpec((C, Hid), lambda b: (0, 0)),
                    pl.BlockSpec((1, Hid), lambda b: (0, 0)),
                    pl.BlockSpec((Hid, C), lambda b: (0, 0)),
                    pl.BlockSpec((1, C), lambda b: (0, 0)),
                ],
                out_specs=pl.BlockSpec((1, C, S), lambda b: (b, 0, 0)),
            ),
            compiler_params=pltpu.CompilerParams(
                dimension_semantics=("parallel",),
                vmem_limit_bytes=vmem_limit),
            cost_estimate=cost,
        )(x_bcs, w1_t, b1_2d, w2_t, b2_2d)
        return out.reshape(B, C, D, H, W)

    # ---------------- tiled streaming path (large slabs) ------------------------
    R = B * C
    tR = _row_tile(R)
    target_block = int(min(8 << 20, max(1 << 20, (vmem_budget - (4 << 20)) // 5)))
    tS = _lane_tile(S, tR, itemsize, target_block)
    nS = -(-S // tS)
    S_pad = nS * tS
    nR = R // tR

    x_rows = x_bcs.reshape(R, S)
    if S_pad != S:
        # TODO(synk): zero-padding costs one extra pass over x; only hit when S has
        # no lane-dense (multiple-of-128) tile near the target size.
        x_rows = jnp.pad(x_rows, ((0, 0), (0, S_pad - S)))

    blk_bytes = tR * tS * itemsize
    stream_vmem = int(min(vmem_budget, max(32 << 20, 5 * blk_bytes + (2 << 20))))

    # ---- pass 1: per-row spatial sum in f32 -------------------------------------
    pool_cost = pl.CostEstimate(
        flops=int(R * S_pad), transcendentals=0,
        bytes_accessed=int(R * S_pad * itemsize + 4 * R))
    sums = pl.pallas_call(
        _pool_kernel,
        out_shape=jax.ShapeDtypeStruct((R, 1), jnp.float32),
        grid_spec=pltpu.PrefetchScalarGridSpec(
            num_scalar_prefetch=0,
            grid=(nR, nS),
            in_specs=[pl.BlockSpec((tR, tS), lambda r, s: (r, s))],
            out_specs=pl.BlockSpec((tR, 1), lambda r, s: (r, 0)),
        ),
        compiler_params=pltpu.CompilerParams(
            dimension_semantics=("parallel", "arbitrary"),
            vmem_limit_bytes=stream_vmem),
        cost_estimate=pool_cost,
    )(x_rows)

    # ---- SE-MLP in plain jnp: a dedicated pallas_call at (B,C)x(C,Hid) is pure
    # ---- MXU padding + launch + HBM round-trip overhead. ------------------------
    pooled = sums.reshape(B, C) * jnp.float32(1.0 / S)
    h = jnp.maximum(jnp.dot(pooled, w1_t, preferred_element_type=jnp.float32) + b1_2d, 0.0)
    scale_bc = jax.nn.sigmoid(jnp.dot(h, w2_t, preferred_element_type=jnp.float32) + b2_2d)
    scale_rows = scale_bc.astype(jnp.float32).reshape(R, 1)

    # ---- pass 2: stream x once, apply per-row scale (mem-bound) -----------------
    # TODO(synk): pipeline_mode=pl.Buffered(3) on the x input is a small v7x win;
    # left at the default depth-2 to keep the VMEM budget simple.
    scale_cost = pl.CostEstimate(
        flops=int(R * S_pad), transcendentals=0,
        bytes_accessed=int(2 * R * S_pad * itemsize + 4 * R))
    out_rows = pl.pallas_call(
        _scale_kernel,
        out_shape=jax.ShapeDtypeStruct((R, S_pad), dtype),
        grid_spec=pltpu.PrefetchScalarGridSpec(
            num_scalar_prefetch=0,
            grid=(nR, nS),
            in_specs=[
                pl.BlockSpec((tR, tS), lambda r, s: (r, s)),
                pl.BlockSpec((tR, 1), lambda r, s: (r, 0)),
            ],
            out_specs=pl.BlockSpec((tR, tS), lambda r, s: (r, s)),
        ),
        compiler_params=pltpu.CompilerParams(
            dimension_semantics=("parallel", "parallel"),
            vmem_limit_bytes=stream_vmem),
        cost_estimate=scale_cost,
    )(x_rows, scale_rows)

    if S_pad != S:
        out_rows = out_rows[:, :S]
    return out_rows.reshape(B, C, D, H, W)


def mcattn_ref(x, w1, b1, w2, b2):
    """Pure-JAX reference of the eval-mode forward (NCDHW)."""
    pooled = jnp.mean(x, axis=(2, 3, 4), keepdims=True)            # (B,C,1,1,1)
    h = jnp.einsum('oc,bcdhw->bodhw', w1, pooled) + b1.reshape(1, -1, 1, 1, 1)
    h = jnp.maximum(h, 0.0)
    s = jnp.einsum('oc,bcdhw->bodhw', w2, h) + b2.reshape(1, -1, 1, 1, 1)
    return x * jax.nn.sigmoid(s)


if __name__ == "__main__":
    # Small shapes consistent with the module: B=2, C=8, D=4, H=8, W=8.
    B, C, D, H, W = 2, 8, 4, 8, 8
    SqueezeFactor = 4
    Hid = max(make_divisible(C // SqueezeFactor, 8), 32)   # -> 32

    key = jax.random.PRNGKey(0)
    kx, k1, k2, k3, k4, kx2 = jax.random.split(key, 6)
    x = jax.random.normal(kx, (B, C, D, H, W), dtype=jnp.float32)

    # Deterministic synthetic parameters (nn.Conv3d 1x1x1 weights squeezed to 2-D).
    w1 = 0.1 * jax.random.normal(k1, (Hid, C), dtype=jnp.float32)
    b1 = 0.1 * jax.random.normal(k2, (Hid,), dtype=jnp.float32)
    w2 = 0.1 * jax.random.normal(k3, (C, Hid), dtype=jnp.float32)
    b2 = 0.1 * jax.random.normal(k4, (C,), dtype=jnp.float32)

    ref = mcattn_ref(x, w1, b1, w2, b2)

    # 1) default dispatch: fused single-pass kernel (per-batch slab fits VMEM).
    out = jax.block_until_ready(mcattn_forward(x, w1, b1, w2, b2))
    assert out.shape == (B, C, D, H, W)
    assert jnp.allclose(out, ref, rtol=1e-5, atol=1e-5), "fused path mismatch"

    # 2) tiled streaming path (pool + jnp MLP + scale), forced at the small shape.
    out_t = jax.block_until_ready(mcattn_forward(x, w1, b1, w2, b2, force_tiled=True))
    assert jnp.allclose(out_t, ref, rtol=1e-5, atol=1e-5), "tiled path mismatch"

    # 3) odd spatial size (S=90): exercises lane padding on the tiled path.
    x_odd = jax.random.normal(kx2, (1, C, 3, 5, 6), dtype=jnp.float32)
    ref_odd = mcattn_ref(x_odd, w1, b1, w2, b2)
    out_odd = jax.block_until_ready(mcattn_forward(x_odd, w1, b1, w2, b2))
    assert jnp.allclose(out_odd, ref_odd, rtol=1e-5, atol=1e-5), "odd-shape mismatch"

    print("KERNEL_OK")
</pallas_src>

<mosaic_0001>
module attributes {stable_mosaic.version = 11 : i64} {
  func.func @_fused_kernel(%arg0: i32, %arg1: memref<1x8x256xf32, #tpu.memory_space<vmem>>, %arg2: memref<8x32xf32, #tpu.memory_space<vmem>>, %arg3: memref<1x32xf32, #tpu.memory_space<vmem>>, %arg4: memref<32x8xf32, #tpu.memory_space<vmem>>, %arg5: memref<1x8xf32, #tpu.memory_space<vmem>>, %arg6: memref<1x8x256xf32, #tpu.memory_space<vmem>>) attributes {dimension_semantics = [#tpu.dimension_semantics<parallel>], iteration_bounds = array<i64: 2>, scalar_prefetch = 0 : i64, scratch_operands = 0 : i64, tpu.core_type = #tpu.core_type<tc>, window_params = [{transform_indices = @transform_0, window_bounds = array<i64: 1, 8, 256>}, {pipeline_mode = #tpu.pipeline_mode<synchronous>, transform_indices = @transform_1, window_bounds = array<i64: 8, 32>}, {pipeline_mode = #tpu.pipeline_mode<synchronous>, transform_indices = @transform_2, window_bounds = array<i64: 1, 32>}, {pipeline_mode = #tpu.pipeline_mode<synchronous>, transform_indices = @transform_3, window_bounds = array<i64: 32, 8>}, {pipeline_mode = #tpu.pipeline_mode<synchronous>, transform_indices = @transform_4, window_bounds = array<i64: 1, 8>}, {transform_indices = @transform_5, window_bounds = array<i64: 1, 8, 256>}]} {
    %c0 = arith.constant 0 : index
    %c0_0 = arith.constant 0 : index
    %c0_1 = arith.constant 0 : index
    %0 = vector.load %arg1[%c0, %c0_0, %c0_1] : memref<1x8x256xf32, #tpu.memory_space<vmem>>, vector<1x8x256xf32>
    %cst = arith.constant dense<0.000000e+00> : vector<1x8xf32>
    %1 = vector.multi_reduction <add>, %0, %cst [2] : vector<1x8x256xf32> to vector<1x8xf32>
    %cst_2 = arith.constant 3.906250e-03 : f32
    %2 = vector.broadcast %cst_2 : f32 to vector<1x8xf32>
    %3 = arith.mulf %1, %2 : vector<1x8xf32>
    %c0_3 = arith.constant 0 : index
    %c0_4 = arith.constant 0 : index
    %4 = vector.load %arg2[%c0_3, %c0_4] : memref<8x32xf32, #tpu.memory_space<vmem>>, vector<8x32xf32>
    %cst_5 = arith.constant dense<0.000000e+00> : vector<1x32xf32>
    %5 = tpu.matmul %3, %4, %cst_5 {dimension_numbers = #tpu.dot_dimension_numbers<[1], [0], [0], [1], [0, 0, 1, 1], [], []>} : vector<1x8xf32>, vector<8x32xf32>, vector<1x32xf32> -> vector<1x32xf32>
    %c0_6 = arith.constant 0 : index
    %c0_7 = arith.constant 0 : index
    %6 = vector.load %arg3[%c0_6, %c0_7] : memref<1x32xf32, #tpu.memory_space<vmem>>, vector<1x32xf32>
    %7 = arith.addf %5, %6 : vector<1x32xf32>
    %cst_8 = arith.constant 0.000000e+00 : f32
    %8 = vector.broadcast %cst_8 : f32 to vector<1x32xf32>
    %9 = arith.maximumf %7, %8 : vector<1x32xf32>
    %c0_9 = arith.constant 0 : index
    %c0_10 = arith.constant 0 : index
    %10 = vector.load %arg4[%c0_9, %c0_10] : memref<32x8xf32, #tpu.memory_space<vmem>>, vector<32x8xf32>
    %cst_11 = arith.constant dense<0.000000e+00> : vector<1x8xf32>
    %11 = tpu.matmul %9, %10, %cst_11 {dimension_numbers = #tpu.dot_dimension_numbers<[1], [0], [0], [1], [0, 0, 1, 1], [], []>} : vector<1x32xf32>, vector<32x8xf32>, vector<1x8xf32> -> vector<1x8xf32>
    %c0_12 = arith.constant 0 : index
    %c0_13 = arith.constant 0 : index
    %12 = vector.load %arg5[%c0_12, %c0_13] : memref<1x8xf32, #tpu.memory_space<vmem>>, vector<1x8xf32>
    %13 = arith.addf %11, %12 : vector<1x8xf32>
    %14 = arith.negf %13 : vector<1x8xf32>
    %15 = math.exp %14 : vector<1x8xf32>
    %cst_14 = arith.constant 1.000000e+00 : f32
    %16 = vector.broadcast %cst_14 : f32 to vector<1x8xf32>
    %17 = arith.addf %16, %15 : vector<1x8xf32>
    %18 = arith.divf %16, %17 : vector<1x8xf32>
    %19 = vector.shape_cast %18 : vector<1x8xf32> to vector<1x8x1xf32>
    %20 = vector.broadcast %19 : vector<1x8x1xf32> to vector<1x8x256xf32>
    %21 = arith.mulf %0, %20 : vector<1x8x256xf32>
    %c0_15 = arith.constant 0 : index
    %c0_16 = arith.constant 0 : index
    %c0_17 = arith.constant 0 : index
    %22 = vector.load %arg6[%c0_15, %c0_16, %c0_17] : memref<1x8x256xf32, #tpu.memory_space<vmem>>, vector<1x8x256xf32>
    tpu.vector_store %arg6[%c0_15, %c0_16, %c0_17], %21 {strides = array<i32>} : memref<1x8x256xf32, #tpu.memory_space<vmem>>, vector<1x8x256xf32>,
    return
  }
  func.func @transform_0(%arg0: i32) -> (i32, i32, i32) {
    %c0_i32 = arith.constant 0 : i32
    %c0_i32_0 = arith.constant 0 : i32
    %c0_i32_1 = arith.constant 0 : i32
    return %arg0, %c0_i32, %c0_i32_0 : i32, i32, i32
  }
  func.func @transform_1(%arg0: i32) -> (i32, i32) {
    %c0_i32 = arith.constant 0 : i32
    %c0_i32_0 = arith.constant 0 : i32
    %c0_i32_1 = arith.constant 0 : i32
    return %c0_i32, %c0_i32_0 : i32, i32
  }
  func.func @transform_2(%arg0: i32) -> (i32, i32) {
    %c0_i32 = arith.constant 0 : i32
    %c0_i32_0 = arith.constant 0 : i32
    %c0_i32_1 = arith.constant 0 : i32
    return %c0_i32, %c0_i32_0 : i32, i32
  }
  func.func @transform_3(%arg0: i32) -> (i32, i32) {
    %c0_i32 = arith.constant 0 : i32
    %c0_i32_0 = arith.constant 0 : i32
    %c0_i32_1 = arith.constant 0 : i32
    return %c0_i32, %c0_i32_0 : i32, i32
  }
  func.func @transform_4(%arg0: i32) -> (i32, i32) {
    %c0_i32 = arith.constant 0 : i32
    %c0_i32_0 = arith.constant 0 : i32
    %c0_i32_1 = arith.constant 0 : i32
    return %c0_i32, %c0_i32_0 : i32, i32
  }
  func.func @transform_5(%arg0: i32) -> (i32, i32, i32) {
    %c0_i32 = arith.constant 0 : i32
    %c0_i32_0 = arith.constant 0 : i32
    %c0_i32_1 = arith.constant 0 : i32
    return %arg0, %c0_i32, %c0_i32_0 : i32, i32, i32
  }
}

</mosaic_0001>

<bundles_post_ra>
// kernel: tpu_custom_call.1
= control target key start
LH: loop header
LB: loop body
LE: loop exit
PB: predicated region body
PF: predicated region fallthrough
CT: control target
= control target key end

     0   :  { %10 = vsyncpa [#allocation3], 0  ;;  %s793_s0 = inlined_call_operand.vmem [shape: f32[2,8,256], index: 0, kind: input, shape index: {}]   ;;  %s794_s1 = inlined_call_operand.vmem [shape: f32[8,32], index: 1, kind: input, shape index: {}]   ;;  %s795_s2 = inlined_call_operand.vmem [shape: f32[1,32], index: 2, kind: input, shape index: {}]   ;;  %s796_s3 = inlined_call_operand.vmem [shape: f32[32,8], index: 3, kind: input, shape index: {}]   ;;  %s797_s4 = inlined_call_operand.vmem [shape: f32[1,8], index: 4, kind: input, shape index: {}]   ;;  %s798_s5 = inlined_call_operand.hbm [shape: f32[2,8,256], index: 5, kind: output, shape index: {}]  }
   0x1   :  { %12 = vsyncpa [#allocation3 + $0x1], 0  ;;  %s672_s18 = smov 0   ;;  %s674_s19 = smov 0  }
   0x2   :  { %s676_s20 = smov 0   ;;  %s678_s21 = smov 0  }
   0x3 LB: > { %s693_s22 = sadd.s32 4294967295, %s636_s21   ;;  %s482_s23 = sadd.s32 4294967294, %s636_s21   ;;  %s636_s21 = sphi %s678_s21, %s804_s21   ;;  %s632_s20 = sphi %s676_s20, %s803_s20   ;;  %s628_s19 = sphi %s674_s19, %s802_s19   ;;  %s624_s18 = sphi %s672_s18, %s801_s18  }
   0x4   : > { %s697_s24 = sadd.s32 1, %s636_s21   ;;  %s135_s25 = sadd.s32 1, %s632_s20 }
   0x5   : > { %s132_s26 = ssub.s32 %s636_s21, %s697_s24  ;;  %p145_p0 = scmp.ne.s32.totalorder %s632_s20, %s628_s19 }
   0x6   : > { %p133_p1 = scmp.eq.s32.totalorder %s132_s26, 0  ;;  %p146_p2 = scmp.eq.s32.totalorder %s693_s22, 1 }
   0x7   : > { %p151_p3 = scmp.ne.s32.totalorder %s628_s19, %s624_s18  ;;  %p152_p4 = scmp.eq.s32.totalorder %s482_s23, 1 }
   0x8   : > { %s708_s27 = scalar_select %p133_p1, %s632_s20, %s135_s25  }
   0x9   : > { %p710_p5 = por %p146_p2, %p145_p0  ;;  %p714_p6 = por %p152_p4, %p151_p3 }
   0xa   : > { %p485_p7 = scmp.ge.s32.totalorder %s636_s21, 1  ;;  %p190_p8 = scmp.lt.s32.totalorder %s636_s21, 3 }
   0xc   : > { %p191_p9 = pnand %p485_p7, %p190_p8 }
   0xd   : > { %p218_p10 = scmp.lt.s32.totalorder (!%p191_p9), %s693_s22, 1  ;;  %v638_v3 = vmov (!%p191_p9), 0.0   ;;  %v229_v4 = vld [vmem:[%s794_s1] sm:$0xff] (!%p191_p9)  ;;  %vm639_vm0 = vmmov (!%p191_p9), 0   ;;  %v313_v6 = vld [vmem:[%s796_s3 + $0x8] sm:$0xff] (!%p191_p9)  ;;  %v640_v7 = vmov (!%p191_p9), 0.0|0.0   ;;  %v232_v9 = vlaneseq (!%p191_p9) }
   0xe   : > { %194 = sbr.rel (%p191_p9) target bundleno = 763 (0x2fb), region = 40  ;;  %506 = vmatprep.subr.mxu0 (!%p191_p9), %v638_v3  ;;  %508 = vmatprep.mubr.msk.f32.mxu0 (!%p191_p9), %vm639_vm0, %v638_v3  ;;  %v312_v5 = vld [vmem:[%s796_s3] sm:$0xff] (!%p191_p9)  ;;  %vm238_vm1 = vcmask (!%p191_p9), 64512   ;;  %v314_v16 = vld [vmem:[%s796_s3 + $0x10] sm:$0xff] (!%p191_p9)  ;;  %v315_v17 = vld [vmem:[%s796_s3 + $0x18] sm:$0xff] (!%p191_p9)  ;;  %vm317_vm2 = vcmask (!%p191_p9), 261120  }
   0xf   : > { %507 = vmatpush3.msra.mxu0 (!%p191_p9), %v229_v4  ;;  %519 = vmatprep.mubr.msk.f32.mxu1 (!%p191_p9), %vm639_vm0, %v638_v3  ;;  %v523_v8 = vpack.c.bf16 (!%p191_p9), %v313_v6, %v312_v5  ;;  %v233_v10 = vand.u32 (!%p191_p9), 127, %v232_v9  ;;  %v235_v11 = vshrl.u32 (!%p191_p9), %v232_v9, 7  ;;  %v526_v18 = vpack.c.bf16 (!%p191_p9), %v315_v17, %v314_v16  ;;  %v230_v19 = vld [vmem:[%s795_s2] sm:$0x1] (!%p191_p9)  ;;  %s215_s8 = sand.u32 (!%p191_p9), 1, %s628_s19   ;;  %s498_s10 = sshll.u32 (!%p191_p9), %s693_s22, 8 }
  0x10   : > { %522 = vmatprep.subr.bf16.mxu1 (!%p191_p9), %v640_v7  ;;  %v316_v24 = vld [vmem:[%s797_s4] sm:$0x1] (!%p191_p9)  ;;  %s751_s15 = scalar_lea.hbm (!%p191_p9), %s798_s5, %s498_s10  ;;  %s409_s16 = scalar_lea.sflag (!%p191_p9), [#allocation3], %s215_s8 }
  0x11   : > { %524 = vmatpush3.bf16.msra.mxu1 (!%p191_p9), %v523_v8  ;;  %v236_v12 = vsub.s32 (!%p191_p9), %v233_v10, %v235_v11  ;;  %v399_v31 = vsub.s32 (!%p191_p9), 0, %v235_v11 }
  0x12   : > { %525 = vmatprep.subr.bf16.mxu1 (!%p191_p9), %v640_v7 }
  0x15   : > { %s219_s30 = scalar_select %p218_p10, %s693_s22, 1  ;;  %527 = vmatpush3.bf16.msra.mxu1 %v526_v18 }
  0x16   : > { %s641_s22 = smov [#allocation2]  }
  0x17   : > { %s497_s6 = sshll.u32 %s219_s30, 4  ;;  %s578_s23 = sshll.u32 %s641_s22, 4  ;;  %s579_s23 = int_to_ptr.vmem [resolvable:$false] %s578_s23 }
  0x18   : > { %s222_s9 = scalar_lea.vmem %s793_s0, %s497_s6  ;;  %s580_s25 = scalar_lea.vmem %s579_s23, 512 }
  0x19   : > { %v223_v0 = vld [vmem:[%s222_s9] sm:$0xff]  ;;  %v224_v1 = vld [vmem:[%s222_s9 + $0x8] sm:$0xff]  ;;  %s486_s9 = sshll.u32 %s215_s8, 4 }
  0x1a   : > { %v225_v2 = vadd.f32 %v224_v1, %v223_v0  ;;  %s217_s11 = scalar_lea.vmem [#allocation2], %s486_s9 }
  0x1b   : > { %s423_s12 = sshll.u32 %s217_s11, 4  ;;  %s753_s12 = int_to_ptr.vmem [resolvable:$true] %s423_s12 }
  0x1c   : > { %226 = vadd.xlane.f32.xlu0 %v225_v2  ;;  %s574_s17 = scalar_lea.vmem %s753_s12, 256  ;;  %p581_p0 = scmp.lt.s32.totalorder %s753_s12, %s579_s23 }
  0x1d   : > { %p575_p11 = scmp.ne.s32.totalorder %s753_s12, %s574_s17  ;;  %p582_p1 = scmp.lt.s32.totalorder %s580_s25, %s574_s17 }
  0x1f   : > { %p576_p12 = pnand %p575_p11, %p710_p5  ;;  %p583_p2 = por %p582_p1, %p581_p0 }
  0x21   : > { %p577_p13 = pneg %p576_p12 }
  0x23   : > { %p584_p3 = pnand %p583_p2, %p577_p13 }
  0xa9   : > { %v227_v13 = vpop.xlane.xlu0 %226 }
  0xaa   : > { %v228_v14 = vmul.f32 0.00390625, %v227_v13 }
  0xac   : > { %v237_v15 = vrot.slane %v228_v14, %v236_v12 }
  0xae   : > { %509 = vmatmul.mubr.msk.f32.vlgmr.msra.gmra.mrb[0].mxu0 %vm238_vm1, %v237_v15 }
 0x181   : > { %v307_v20 = vpop.f32.mrb[0].mxu0 }
 0x182   : > { %v308_v21 = vadd.f32 %v307_v20, %v230_v19  ;;  %v510_v22 = vpop.f32.mrb[1].mxu0 }
 0x184   : > { %v311_v23 = vmax.f32 %v308_v21, 0.0 }
 0x186   : > { %520 = vmatmul.mubr.msk.f32.vlgmr.msra.gmra.mrb[0].mxu1 %vm317_vm2, %v311_v23 }
 0x259   : > { %v387_v25 = vpop.f32.mrb[0].mxu1 }
 0x25a   : > { %v388_v26 = vadd.f32 %v387_v25, %v316_v24  ;;  %v521_v27 = vpop.f32.mrb[1].mxu1 }
 0x25c   : > { %v491_v28 = vmul.f32 -1.442695, %v388_v26 }
 0x25e   : > { %570 = vpow2.f32 %v491_v28 }
 0x268   : > { %v571_v29 = vpop.eup %570 }
 0x269   : > { %v394_v30 = vadd.f32 1.0, %v571_v29 }
 0x26b   : > { %572 = vrcp.f32 %v394_v30 }
 0x275   : > { %v573_v32 = vpop.eup %572 }
 0x276   : > { %v400_v33 = vrot.slane %v573_v32, %v399_v31 }
 0x278   : > { %402 = vbcast.lane.b32.xlu0 %v400_v33, 256 }
 0x2ea   : > { %v403_v34 = vpop.permute.xlu0 %402 }
 0x2eb   : > { %v404_v35 = vmul.f32 %v403_v34, %v223_v0  ;;  %v405_v36 = vmul.f32 %v403_v34, %v224_v1 }
 0x2ed   : > { %406 = vst [vmem:[%s217_s11] sm:$0xff] %v404_v35  ;;  %407 = vst [vmem:[%s217_s11 + $0x8] sm:$0xff] %v405_v36 }
 0x2ee   : > { %587 = shalt.err (!%p584_p3)
}
 0x2ef   : > { %s588_s26 = scalar_lea.hbm %s751_s15, 256  ;;  %s592_s7 = scalar_lea.hbm %s798_s5, 512 }
 0x2f0   : > { %p589_p4 = scmp.ne.s32.totalorder %s751_s15, %s588_s26  ;;  %p593_p9 = scmp.lt.u32.totalorder %s751_s15, %s798_s5 }
 0x2f1   : > { %p594_p10 = scmp.lt.u32.totalorder %s592_s7, %s588_s26  ;;  %p596_p12 = scmp.lt.u32.totalorder %s588_s26, %s751_s15 }
 0x2f2   : > { %p590_p7 = pnand %p589_p4, %p710_p5 }
 0x2f3   : > { %p595_p11 = por %p594_p10, %p593_p9 }
 0x2f4   : > { %p591_p8 = pneg %p590_p7 }
 0x2f5   : > { %p597_p13 = por %p596_p12, %p595_p11 }
 0x2f7   : > { %p598_p0 = pnand %p597_p13, %p591_p8 }
 0x2f9   : > { %601 = shalt.err (!%p598_p0)
}
 0x2fa   : > { %528 = dma.vmem_to_hbm [thread:$0]  (%p710_p5), %s753_s12, 256, %s751_s15, %s409_s16  }
 0x2fb PF: > { %p534_p1 = scmp.ge.s32.totalorder %s636_s21, 2  ;;  %s435_s10 = sand.u32 1, %s624_s18  }
 0x2fc   : > { %s436_s11 = scalar_lea.sflag [#allocation3], %s435_s10 }
 0x2fd   : > { %p531_p2 = pnand %p534_p1, %p714_p6 }
 0x2ff   : > { %619 = dma.done.wait (!%p531_p2), %s436_s11, 256  }
 0x300   : > { %621 = vsyncadd (!%p531_p2), %s436_s11, 4294967040  ;;  %p15_p3 = scmp.ge.s32.totalorder %s697_s24, 4   ;;  %s801_s18 = smov %s628_s19 }
 0x301   : > { %s802_s19 = smov %s632_s20  ;;  %s803_s20 = smov %s708_s27 }
 0x302   : > { %s804_s21 = smov %s697_s24  ;;  %17 = sbr.rel (!%p15_p3) target bundleno = 3 (0x3), region = 75 }
 0x309   :  { %441 = vsyncpa [#allocation3], 1 }
 0x30a   :  { %443 = vsyncpa [#allocation3 + $0x1], 1 }

</bundles_post_ra>
